<compile_context>
chip_gen: v6e
topology: v6e:2x2x1
jax: 0.10.0
libtpu: 0.0.40
codegen_flags: <defaults>
</compile_context>

<pallas_src>
import functools

import jax
import jax.numpy as jnp
from jax.experimental import pallas as pl
from jax.experimental.pallas import tpu as pltpu


def _round_up(x, m):
    return ((x + m - 1) // m) * m


def _pick_group(embedding_dim):
    # Pack g tokens per 128-lane output row when D divides 128.
    if embedding_dim < 128 and 128 % embedding_dim == 0:
        return 128 // embedding_dim
    return 1


def build_fused_table(int_to_feat_matrix, extra_embeddings, max_count_int):
    """Build the fused (and, for D < 128, block-diagonal replicated) table.

    Call ONCE per parameter set and reuse across forward calls — the concat /
    replication is deliberately hoisted out of the per-call path."""
    table = jnp.concatenate(
        [int_to_feat_matrix[:max_count_int].astype(jnp.float32),
         extra_embeddings.astype(jnp.float32)], axis=0)            # (Vf, D)
    vf, d = table.shape
    g = _pick_group(d)
    if g > 1:
        # table_bd[p*Vf + v, p*D:(p+1)*D] = table[v]; zero elsewhere.
        eye = jnp.eye(g, dtype=jnp.float32)
        table = jnp.einsum("pq,vd->pvqd", eye, table).reshape(g * vf, g * d)
    return table, g


def _gather_kernel(tok_ref, table_ref, out_ref, *, group):
    # tok_ref   : (tile_rows, group)     int32   token ids, `group` per row
    # table_ref : (group*Vf, group*D)    float32 fused block-diagonal table
    # out_ref   : (tile_rows, group*D)   float32 lane-dense output rows
    tok = tok_ref[...]
    tile_rows = tok.shape[0]
    gvf = table_ref.shape[0]
    vf = gvf // group

    # Clip keeps out-of-range ids from silently producing zero rows.
    idx = jnp.clip(tok, 0, vf - 1)                                 # (tile_rows, g)
    iota = jax.lax.broadcasted_iota(jnp.int32, (tile_rows, gvf), 1)

    # One-hot over the fused columns: token p of each group hits column
    # p*Vf + idx_p.  The per-p blocks are disjoint, so summing the compares
    # yields one combined one-hot; a single MXU matmul then performs both
    # gathers and the mask blend exactly (exactly one row per D-segment).
    onehot = (iota == idx[:, 0:1]).astype(jnp.float32)
    for p in range(1, group):                                      # static, <= 4
        onehot = onehot + (iota == (idx[:, p:p + 1] + p * vf)).astype(jnp.float32)

    out_ref[...] = jnp.dot(onehot, table_ref[...],
                           preferred_element_type=jnp.float32)


def _pick_tile_rows(rows, onehot_lanes):
    """Big tiles to amortize per-step overhead, bounded one-hot scratch,
    >= 2 steps for large inputs (v7x megacore), exact divisor when possible."""
    onehot_budget = 4 * 1024 * 1024                 # f32 one-hot scratch / step
    cap = (onehot_budget // (onehot_lanes * 4)) // 8 * 8
    cap = max(8, min(cap, 4096))                    # output block <= ~2 MiB
    if rows <= cap:
        if rows >= 2048 and rows % 16 == 0:
            return rows // 2                        # 2 steps, still no padding
        return rows                                 # single full-extent block
    for t in range(cap, 7, -8):                     # largest 8-aligned divisor
        if rows % t == 0:
            return t
    return cap                                      # fallback: pad the tail


def int_featurizer_forward(tokens, fused_table, group):
    """tokens: (..., L) int -> (..., L * embedding_dim) float32."""
    orig_shape = tokens.shape
    seq_len = orig_shape[-1]
    gvf, gd = fused_table.shape
    d = gd // group

    tok_flat = tokens.reshape(-1).astype(jnp.int32)
    n = tok_flat.shape[0]

    # Group `group` consecutive tokens per row (lane-dense output packing).
    rows = -(-n // group)
    pad_tok = rows * group - n
    if pad_tok:
        tok_flat = jnp.pad(tok_flat, (0, pad_tok))  # id 0 is a valid row
    tok2d = tok_flat.reshape(rows, group)

    onehot_lanes = _round_up(gvf, 128)
    tile_rows = _pick_tile_rows(rows, onehot_lanes)
    rows_pad = _round_up(rows, tile_rows)
    if rows_pad != rows:
        tok2d = jnp.pad(tok2d, ((0, rows_pad - rows), (0, 0)))

    grid = (rows_pad // tile_rows,)

    # Per-step VMEM estimate: double-buffered token + output blocks, the
    # loop-invariant table, and the one-hot matmul operand.  Raise the scoped
    # VMEM limit only when the default (16 MiB on v5e) could be tight.
    out_lanes = _round_up(gd, 128)
    vmem_est = (2 * tile_rows * 128 * 4                      # token blocks
                + 2 * tile_rows * out_lanes * 4              # output blocks
                + 2 * _round_up(gvf, 8) * out_lanes * 4      # fused table
                + tile_rows * onehot_lanes * 4)              # one-hot scratch
    cp_kwargs = dict(dimension_semantics=("parallel",))
    if vmem_est > 12 * 1024 * 1024:
        cp_kwargs["vmem_limit_bytes"] = int(min(vmem_est + (4 << 20),
                                                56 * 1024 * 1024))

    out = pl.pallas_call(
        functools.partial(_gather_kernel, group=group),
        out_shape=jax.ShapeDtypeStruct((rows_pad, gd), jnp.float32),
        grid_spec=pltpu.PrefetchScalarGridSpec(
            num_scalar_prefetch=0,
            grid=grid,
            in_specs=[
                pl.BlockSpec((tile_rows, group), lambda i: (i, 0)),
                pl.BlockSpec((gvf, gd), lambda i: (0, 0)),   # loop-invariant
            ],
            out_specs=pl.BlockSpec((tile_rows, gd), lambda i: (i, 0)),
        ),
        compiler_params=pltpu.CompilerParams(**cp_kwargs),
    )(tok2d, fused_table)

    # Row-major (rows, g*D) flattens to exactly the same element order as
    # (N, D); with no padding the reshape below is free (metadata only).
    if rows_pad == rows and pad_tok == 0:
        return out.reshape(*orig_shape[:-1], seq_len * d)
    flat = out.reshape(-1)[: n * d]                  # ragged tail: one extra copy
    return flat.reshape(*orig_shape[:-1], seq_len * d)


def reference_forward(tokens, int_to_feat_matrix, extra_embeddings, max_count_int):
    # Pure-JAX reference mirroring the PyTorch forward exactly.
    orig_shape = tokens.shape
    mask = (tokens >= max_count_int).astype(jnp.float32)
    tok = tokens.astype(jnp.int32)
    norm_embeds = int_to_feat_matrix[tok]
    extra_idx = jnp.maximum(tok, max_count_int) - max_count_int
    extra_embeds = extra_embeddings[extra_idx]
    out = (1.0 - mask)[..., None] * norm_embeds + mask[..., None] * extra_embeds
    return out.reshape(*orig_shape[:-1], -1)


if __name__ == "__main__":
    # Small, module-consistent shapes.
    embedding_dim = 32
    max_count_int = 16
    num_extra_embeddings = 1          # DEFAULT_NUM_EXTRA_EMBEDDINGS
    batch, seq = 2, 16

    key = jax.random.PRNGKey(0)
    k1, k2, k3 = jax.random.split(key, 3)

    # TODO(synk): int_to_feat_matrix is defined only by subclasses of the base
    # class; here it is a deterministic synthetic table with rows covering
    # both normal ints [0, max_count) and the extra token ids.
    int_to_feat_matrix = jax.random.normal(
        k1, (max_count_int + num_extra_embeddings, embedding_dim), jnp.float32)
    # _extra_embeddings ~ N(0, 1), as in nn.init.normal_
    extra_embeddings = jax.random.normal(
        k2, (num_extra_embeddings, embedding_dim), jnp.float32)

    # Integer tokens, including some >= max_count_int (the "extra" / pad ids).
    tokens = jax.random.randint(
        k3, (batch, seq), 0, max_count_int + num_extra_embeddings, jnp.int32)

    # Build the fused lookup table ONCE (hoisted out of the per-call path).
    fused_table, group = build_fused_table(
        int_to_feat_matrix, extra_embeddings, max_count_int)

    out = int_featurizer_forward(tokens, fused_table, group)
    out = jax.block_until_ready(out)

    ref = reference_forward(tokens, int_to_feat_matrix, extra_embeddings,
                            max_count_int)

    assert out.shape == (batch, seq * embedding_dim), out.shape
    assert jnp.allclose(out, ref, atol=1e-5, rtol=1e-5), "mismatch vs reference"
    print("KERNEL_OK")
</pallas_src>

<mosaic_0001>
module attributes {stable_mosaic.version = 11 : i64} {
  func.func @_gather_kernel(%arg0: i32, %arg1: memref<8x4xi32, #tpu.memory_space<vmem>>, %arg2: memref<68x128xf32, #tpu.memory_space<vmem>>, %arg3: memref<8x128xf32, #tpu.memory_space<vmem>>) attributes {dimension_semantics = [#tpu.dimension_semantics<parallel>], iteration_bounds = array<i64: 1>, scalar_prefetch = 0 : i64, scratch_operands = 0 : i64, tpu.core_type = #tpu.core_type<tc>, window_params = [{transform_indices = @transform_0, window_bounds = array<i64: 8, 4>}, {pipeline_mode = #tpu.pipeline_mode<synchronous>, transform_indices = @transform_1, window_bounds = array<i64: 68, 128>}, {transform_indices = @transform_2, window_bounds = array<i64: 8, 128>}]} {
    %c0 = arith.constant 0 : index
    %c0_0 = arith.constant 0 : index
    %0 = vector.load %arg1[%c0, %c0_0] : memref<8x4xi32, #tpu.memory_space<vmem>>, vector<8x4xi32>
    %c0_i32 = arith.constant 0 : i32
    %c16_i32 = arith.constant 16 : i32
    %1 = vector.broadcast %c0_i32 : i32 to vector<8x4xi32>
    %2 = arith.maxsi %1, %0 : vector<8x4xi32>
    %3 = vector.broadcast %c16_i32 : i32 to vector<8x4xi32>
    %4 = arith.minsi %3, %2 : vector<8x4xi32>
    %5 = tpu.iota {dimensions = array<i32: 1>} : vector<8x68xi32>
    %6 = vector.extract_strided_slice %4 {offsets = [0, 0], sizes = [8, 1], strides = [1, 1]} : vector<8x4xi32> to vector<8x1xi32>
    %7 = vector.broadcast %6 : vector<8x1xi32> to vector<8x68xi32>
    %8 = arith.cmpi eq, %5, %7 : vector<8x68xi32>
    %9 = arith.extui %8 : vector<8x68xi1> to vector<8x68xi32>
    %10 = arith.sitofp %9 : vector<8x68xi32> to vector<8x68xf32>
    %11 = vector.extract_strided_slice %4 {offsets = [0, 1], sizes = [8, 1], strides = [1, 1]} : vector<8x4xi32> to vector<8x1xi32>
    %c17_i32 = arith.constant 17 : i32
    %12 = vector.broadcast %c17_i32 : i32 to vector<8x1xi32>
    %13 = arith.addi %11, %12 : vector<8x1xi32>
    %14 = vector.broadcast %13 : vector<8x1xi32> to vector<8x68xi32>
    %15 = arith.cmpi eq, %5, %14 : vector<8x68xi32>
    %16 = arith.extui %15 : vector<8x68xi1> to vector<8x68xi32>
    %17 = arith.sitofp %16 : vector<8x68xi32> to vector<8x68xf32>
    %18 = arith.addf %10, %17 : vector<8x68xf32>
    %19 = vector.extract_strided_slice %4 {offsets = [0, 2], sizes = [8, 1], strides = [1, 1]} : vector<8x4xi32> to vector<8x1xi32>
    %c34_i32 = arith.constant 34 : i32
    %20 = vector.broadcast %c34_i32 : i32 to vector<8x1xi32>
    %21 = arith.addi %19, %20 : vector<8x1xi32>
    %22 = vector.broadcast %21 : vector<8x1xi32> to vector<8x68xi32>
    %23 = arith.cmpi eq, %5, %22 : vector<8x68xi32>
    %24 = arith.extui %23 : vector<8x68xi1> to vector<8x68xi32>
    %25 = arith.sitofp %24 : vector<8x68xi32> to vector<8x68xf32>
    %26 = arith.addf %18, %25 : vector<8x68xf32>
    %27 = vector.extract_strided_slice %4 {offsets = [0, 3], sizes = [8, 1], strides = [1, 1]} : vector<8x4xi32> to vector<8x1xi32>
    %c51_i32 = arith.constant 51 : i32
    %28 = vector.broadcast %c51_i32 : i32 to vector<8x1xi32>
    %29 = arith.addi %27, %28 : vector<8x1xi32>
    %30 = vector.broadcast %29 : vector<8x1xi32> to vector<8x68xi32>
    %31 = arith.cmpi eq, %5, %30 : vector<8x68xi32>
    %32 = arith.extui %31 : vector<8x68xi1> to vector<8x68xi32>
    %33 = arith.sitofp %32 : vector<8x68xi32> to vector<8x68xf32>
    %34 = arith.addf %26, %33 : vector<8x68xf32>
    %c0_1 = arith.constant 0 : index
    %c0_2 = arith.constant 0 : index
    %35 = vector.load %arg2[%c0_1, %c0_2] : memref<68x128xf32, #tpu.memory_space<vmem>>, vector<68x128xf32>
    %cst = arith.constant dense<0.000000e+00> : vector<8x128xf32>
    %36 = tpu.matmul %34, %35, %cst {dimension_numbers = #tpu.dot_dimension_numbers<[1], [0], [0], [1], [0, 0, 1, 1], [], []>} : vector<8x68xf32>, vector<68x128xf32>, vector<8x128xf32> -> vector<8x128xf32>
    %c0_3 = arith.constant 0 : index
    %c0_4 = arith.constant 0 : index
    %37 = vector.load %arg3[%c0_3, %c0_4] : memref<8x128xf32, #tpu.memory_space<vmem>>, vector<8x128xf32>
    tpu.vector_store %arg3[%c0_3, %c0_4], %36 {strides = array<i32>} : memref<8x128xf32, #tpu.memory_space<vmem>>, vector<8x128xf32>,
    return
  }
  func.func @transform_0(%arg0: i32) -> (i32, i32) {
    %c0_i32 = arith.constant 0 : i32
    %c0_i32_0 = arith.constant 0 : i32
    return %arg0, %c0_i32 : i32, i32
  }
  func.func @transform_1(%arg0: i32) -> (i32, i32) {
    %c0_i32 = arith.constant 0 : i32
    %c0_i32_0 = arith.constant 0 : i32
    %c0_i32_1 = arith.constant 0 : i32
    return %c0_i32, %c0_i32_0 : i32, i32
  }
  func.func @transform_2(%arg0: i32) -> (i32, i32) {
    %c0_i32 = arith.constant 0 : i32
    %c0_i32_0 = arith.constant 0 : i32
    return %arg0, %c0_i32 : i32, i32
  }
}

</mosaic_0001>

<bundles_post_ra>
// kernel: tpu_custom_call.1
= control target key start
LH: loop header
LB: loop body
LE: loop exit
PB: predicated region body
PF: predicated region fallthrough
CT: control target
= control target key end

     0   :  { %7 = vsyncpa [#allocation3], 0  ;;  %s296_s0 = inlined_call_operand.vmem [shape: s32[8,4], index: 0, kind: input, shape index: {}]   ;;  %s297_s1 = inlined_call_operand.hbm [shape: f32[68,128], index: 1, kind: input, shape index: {}]   ;;  %s298_s2 = inlined_call_operand.hbm [shape: f32[8,128], index: 2, kind: output, shape index: {}]  }
   0x1   :  { %8 = vsyncpa [#allocation4], 0  ;;  %s262_s9 = smov [#allocation2]  }
   0x2   :  { %s16_s10 = sshll.u32 %s262_s9, 4  ;;  %s17_s10 = int_to_ptr.vmem [resolvable:$true] %s16_s10 }
   0x3   :  { %s226_s11 = scalar_lea.vmem %s17_s10, 1152  ;;  %p231_p1 = scmp.lt.s32.totalorder %s17_s10, %s17_s10 }
   0x4   :  { %p227_p0 = scmp.ne.s32.totalorder %s17_s10, %s226_s11  ;;  %p232_p2 = scmp.lt.s32.totalorder %s226_s11, %s226_s11 }
   0x6   :  { %p233_p3 = por %p232_p2, %p231_p1 }
   0x8   :  { %p234_p4 = pnand %p233_p3, %p227_p0 }
   0xa   :  { %237 = shalt.err (!%p234_p4)
}
   0xb   :  { %s263_s12 = smov 128   ;;  %s264_s13 = smov 8  }
   0xc   :  { %22 = dma.hbm_to_vmem [thread:$0]  %s297_s1, 1152, %s17_s10, [#allocation3], %s263_s12, %s263_s12, %s264_s13  }
   0xd   :  { %258 = dma.done.wait [#allocation3], 1152  }
   0xe   :  { %259 = vsyncadd [#allocation3], 4294966144  ;;  %v265_v0 = vmov 0   ;;  %v266_v1 = vmov 2   ;;  %v267_v2 = vmov 0.0   ;;  %vm76_vm0 = vcmask 1043456  }
   0xf   :  { %213 = vset.pattern.permute.xlu0 %v265_v0  ;;  %215 = vset.pattern.permute.xlu1 %v266_v1  ;;  %v26_v3 = vld [vmem:[%s296_s0] sm:$0xff]  ;;  %v70_v5 = vld [vmem:[#allocation2 + $0x38] sm:$0xff]  ;;  %v69_v7 = vld [vmem:[#allocation2 + $0x30] sm:$0xff]  ;;  %v268_v15 = vmov 1   ;;  %v269_v17 = vmov 3   ;;  %vm270_vm3 = vmmov 0   ;;  %v31_v20 = vlaneseq }
  0x10   :  { %182 = vmatprep.subr.mxu0 %v267_v2  ;;  %v71_v4 = vld [vmem:[#allocation2 + $0x40] sm:$0xf]  ;;  %vm27_vm1 = vcmp.gt.s32.totalorder %v26_v3, 0  ;;  %v68_v9 = vld [vmem:[#allocation2 + $0x28] sm:$0xff]  ;;  %v66_v14 = vld [vmem:[#allocation2 + $0x18] sm:$0xff]  ;;  %200 = vmatprep.mubr.msk.f32.mxu0 %vm270_vm3, %v267_v2  ;;  %vm72_vm8 = vcmask 556032  }
  0x11   :  { %183 = vmatpush3.msk.msra.mxu0 %vm76_vm0, %v71_v4  ;;  %v28_v6 = vsel %vm27_vm1, %v26_v3, 0  ;;  %v67_v12 = vld [vmem:[#allocation2 + $0x20] sm:$0xff]  ;;  %v65_v16 = vld [vmem:[#allocation2 + $0x10] sm:$0xff]  ;;  %v64_v18 = vld [vmem:[#allocation2 + $0x8] sm:$0xff]  ;;  %v32_v21 = vand.u32 127, %v31_v20  ;;  %s271_s0 = smov [#allocation5]  }
  0x12   :  { %184 = vmatprep.subr.mxu0 %v267_v2  ;;  %vm29_vm2 = vcmp.lt.s32.totalorder %v28_v6, 16  ;;  %v63_v19 = vld [vmem:[#allocation2] sm:$0xff]  ;;  %s157_s1 = sshll.u32 %s271_s0, 4  ;;  %s158_s1 = int_to_ptr.vmem [resolvable:$true] %s157_s1 }
  0x13   :  { %185 = vmatpush3.msra.mxu0 %v70_v5  ;;  %v30_v8 = vsel %vm29_vm2, %v28_v6, 16  ;;  %s238_s18 = scalar_lea.vmem %s158_s1, 128  ;;  %p243_p6 = scmp.lt.s32.totalorder %s158_s1, %s158_s1 }
  0x14   :  { %186 = vmatprep.subr.mxu0 %v267_v2  ;;  %34 = vperm.xlu0 %213, %v30_v8   ;;  %v47_v10 = vadd.s32 34, %v30_v8  ;;  %v39_v11 = vadd.s32 17, %v30_v8  ;;  %v55_v13 = vadd.s32 51, %v30_v8  ;;  %p239_p5 = scmp.ne.s32.totalorder %s158_s1, %s238_s18  ;;  %p244_p7 = scmp.lt.s32.totalorder %s238_s18, %s238_s18 }
  0x15   :  { %187 = vmatpush3.msra.mxu0 %v69_v7 }
  0x16   :  { %188 = vmatprep.subr.mxu0 %v267_v2  ;;  %49 = vperm.xlu1 %215, %v47_v10   ;;  %p245_p8 = por %p244_p7, %p243_p6 }
  0x17   :  { %189 = vmatpush3.msra.mxu0 %v68_v9 }
  0x18   :  { %190 = vmatprep.subr.mxu0 %v267_v2  ;;  %214 = vset.pattern.permute.xlu0 %v268_v15  ;;  %p246_p9 = pnand %p245_p8, %p239_p5 }
  0x19   :  { %191 = vmatpush3.msra.mxu0 %v67_v12  ;;  %41 = vperm.xlu0 %214, %v39_v11  }
  0x1a   :  { %192 = vmatprep.subr.mxu0 %v267_v2  ;;  %216 = vset.pattern.permute.xlu1 %v269_v17 }
  0x1b   :  { %193 = vmatpush3.msra.mxu0 %v66_v14  ;;  %57 = vperm.xlu1 %216, %v55_v13  }
  0x1c   :  { %194 = vmatprep.subr.mxu0 %v267_v2 }
  0x1d   :  { %195 = vmatpush3.msra.mxu0 %v65_v16  ;;  %217 = vset.pattern.permute.xlu0 %v269_v17 }
  0x1e   :  { %196 = vmatprep.subr.mxu0 %v267_v2 }
  0x1f   :  { %197 = vmatpush3.msra.mxu0 %v64_v18 }
  0x20   :  { %198 = vmatprep.subr.mxu0 %v267_v2 }
  0x21   :  { %199 = vmatpush3.msra.mxu0 %v63_v19 }
  0x8f   :  { %v35_v22 = vpop.permute.xlu0 %34 }
  0x90   :  { %vm36_vm4 = vcmp.eq.s32.totalorder %v32_v21, %v35_v22 }
  0x91   :  { %v50_v23 = vpop.permute.xlu1 %49  ;;  %v166_v25 = vsel %vm36_vm4, 1.0, %v267_v2 }
  0x92   :  { %vm51_vm5 = vcmp.eq.s32.totalorder %v32_v21, %v50_v23 }
  0x93   :  { %v168_v29 = vsel %vm51_vm5, 1.0, %v267_v2 }
  0x94   :  { %v42_v24 = vpop.permute.xlu0 %41 }
  0x95   :  { %vm43_vm6 = vcmp.eq.s32.totalorder %v32_v21, %v42_v24 }
  0x96   :  { %v167_v26 = vsel %vm43_vm6, 1.0, %v267_v2  ;;  %v58_v27 = vpop.permute.xlu1 %57 }
  0x97   :  { %v46_v28 = vadd.f32 %v167_v26, %v166_v25  ;;  %vm59_vm7 = vcmp.eq.s32.totalorder %v32_v21, %v58_v27 }
  0x98   :  { %v169_v30 = vsel %vm59_vm7, 1.0, %v267_v2 }
  0x99   :  { %v54_v31 = vadd.f32 %v168_v29, %v46_v28 }
  0x9b   :  { %v62_v32 = vadd.f32 %v169_v30, %v54_v31 }
  0x9d   :  { %201 = vmatmul.mubr.msk.f32.vlgmr.msra.gmra.mxu0 %vm72_vm8, %v62_v32 }
 0x15d   :  { %v146_v33 = vpop.f32.mrf.mxu0 }
 0x15e   :  { %150 = vst [vmem:[#allocation5] sm:$0xff] %v146_v33 }
 0x15f   :  { %v202_v34 = vpop.f32.mrf.mxu0 }
 0x160   :  { %249 = shalt.err (!%p246_p9)
}
 0x161   :  { %160 = dma.vmem_to_hbm [thread:$0]  %s158_s1, 128, %s298_s2, [#allocation4]  }
 0x162   :  { %260 = dma.done.wait [#allocation4], 128  }
 0x163   :  { %261 = vsyncadd [#allocation4], 4294967168 }
 0x164   :  { %164 = vsyncpa [#allocation3], 1 }
 0x165   :  { %165 = vsyncpa [#allocation4], 1 }

</bundles_post_ra>
